<compile_context>
chip_gen: v5e
topology: v5e:2x2
jax: 0.10.0
libtpu: 0.0.40
codegen_flags: <defaults>
</compile_context>

<pallas_src>
import jax
import jax.numpy as jnp
from jax.experimental import pallas as pl
from jax.experimental.pallas import tpu as pltpu


def _combined_loss_kernel(pred_ref, target_ref, out_ref):
    """One (b, c) row x one HW chunk.

    pred_ref, target_ref: (1, sub_tile, 128) logits / targets.
    out_ref:              (1, 3, 128) resident per-row accumulator:
                            row 0 = elementwise BCE sum (lane partials)
                            row 1 = sum(sigmoid(x) * t)   (intersection)
                            row 2 = sum(sigmoid(x) + t)   (union)
    """
    k = pl.program_id(1)

    @pl.when(k == 0)
    def _init():
        out_ref[...] = jnp.zeros_like(out_ref)

    x = pred_ref[...].astype(jnp.float32)
    t = target_ref[...].astype(jnp.float32)

    # Share exp(-|x|) between BCE and the sigmoid: EUP work per element is
    # exp + log1p + approx-reciprocal (was exp + log + exp + divide).
    e = jnp.exp(-jnp.abs(x))
    # Numerically stable BCE-with-logits: max(x,0) - x*t + log1p(exp(-|x|)).
    bce = jnp.maximum(x, 0.0) - x * t + jnp.log1p(e)

    # sigmoid(x) from the same e:  1/(1+e) if x>=0 else e/(1+e).
    r = pl.reciprocal(1.0 + e, approx=True)
    r = r * (2.0 - (1.0 + e) * r)        # one Newton step (VPU, free) -> ~f32 exact
    p = jnp.where(x >= 0.0, r, e * r)

    # Sublane-only reductions (keep lanes): 3 XLU pushes per tile; the final
    # cross-lane reduce is deferred to the (tiny) wrapper combine.
    out_ref[:, 0:1, :] += jnp.sum(bce, axis=1, keepdims=True)
    out_ref[:, 1:2, :] += jnp.sum(p * t, axis=1, keepdims=True)
    out_ref[:, 2:3, :] += jnp.sum(p + t, axis=1, keepdims=True)


def _per_input_tile_budget_bytes():
    # 2 inputs x 2 pipeline buffers per tile: keep the streaming working set
    # well under scoped VMEM on every generation (v7x: 64 MiB physical).
    try:
        vmem = pltpu.get_tpu_info().vmem_capacity_bytes
    except Exception:
        vmem = 64 * 1024 * 1024  # conservative (v7x-sized) fallback
    return max(512 * 1024, vmem // 32)  # ~2 MiB/input on v7x, ~4 MiB on v5e/v6e


def _pick_sub_tile(n_sub, itemsize, budget_bytes):
    """Largest sublane-tile that divides n_sub, fits the budget, and is either
    a multiple of 8 or the full extent — so no padded/garbage block ever feeds
    the reduction."""
    max_sublanes = max(8, budget_bytes // (128 * itemsize))
    if n_sub <= max_sublanes:
        return n_sub
    t = (max_sublanes // 8) * 8
    while t >= 8:
        if n_sub % t == 0:
            return t
        t -= 8
    return n_sub  # fall back to whole-row blocks (always correct)


def combined_loss(pred, target, weight_bce=1.0, weight_dice=1.0, smooth=1e-5):
    """pred, target: [B, C, H, W] (C == 1 in the PyTorch module). Returns f32 scalar."""
    B, C, H, W = pred.shape
    assert target.shape == pred.shape
    bc, hw = B * C, H * W
    if hw % 128 != 0:
        # TODO(synk): pad the spatial axis to a multiple of 128 and mask the
        # tail lanes inside the kernel instead of rejecting the shape.
        raise ValueError(f"H*W must be a multiple of 128, got {hw}")
    n_sub = hw // 128

    # bf16 inputs are supported too (halves HBM traffic); they are cast to f32
    # inside the kernel after the DMA.
    pred3 = pred.reshape(bc, n_sub, 128)
    target3 = target.reshape(bc, n_sub, 128)

    itemsize = max(pred3.dtype.itemsize, target3.dtype.itemsize)
    sub_tile = _pick_sub_tile(n_sub, itemsize, _per_input_tile_budget_bytes())
    n_chunks = n_sub // sub_tile

    n_elems = bc * hw
    cost = pl.CostEstimate(
        flops=14 * n_elems,
        transcendentals=3 * n_elems,
        bytes_accessed=(pred3.size * pred3.dtype.itemsize
                        + target3.size * target3.dtype.itemsize
                        + bc * 3 * 128 * 4),
    )

    partials = pl.pallas_call(
        _combined_loss_kernel,
        out_shape=jax.ShapeDtypeStruct((bc, 3, 128), jnp.float32),
        grid=(bc, n_chunks),
        in_specs=[
            pl.BlockSpec((1, sub_tile, 128), lambda b, k: (b, k, 0)),
            pl.BlockSpec((1, sub_tile, 128), lambda b, k: (b, k, 0)),
        ],
        out_specs=pl.BlockSpec((1, 3, 128), lambda b, k: (b, 0, 0)),
        compiler_params=pltpu.CompilerParams(
            dimension_semantics=("parallel", "arbitrary"),
            vmem_limit_bytes=32 * 1024 * 1024,
        ),
        cost_estimate=cost,
        # If the DMA is still exposed at small (v7x) tiles, bump input
        # pipelining with pipeline_mode=pl.Buffered(3) on the in_specs.
    )(pred3, target3)

    # Tiny O(bc * 128) final combine in plain JAX; dice division stays exact.
    bce_sum = jnp.sum(partials[:, 0, :])
    intersection = jnp.sum(partials[:, 1, :], axis=-1)   # (bc,)
    union = jnp.sum(partials[:, 2, :], axis=-1)          # (bc,)

    bce_loss = bce_sum / n_elems
    dice = (2.0 * intersection + smooth) / (union + smooth)
    d_loss = 1.0 - jnp.mean(dice)
    return weight_bce * bce_loss + weight_dice * d_loss


def _reference_loss(pred, target, weight_bce=1.0, weight_dice=1.0, smooth=1e-5):
    x = pred.astype(jnp.float32)
    t = target.astype(jnp.float32)
    bce = jnp.mean(jnp.maximum(x, 0.0) - x * t + jnp.log1p(jnp.exp(-jnp.abs(x))))
    p = jax.nn.sigmoid(x)
    inter = jnp.sum(p * t, axis=(2, 3))
    union = jnp.sum(p, axis=(2, 3)) + jnp.sum(t, axis=(2, 3))
    dice = (2.0 * inter + smooth) / (union + smooth)
    d_loss = 1.0 - jnp.mean(dice)
    return weight_bce * bce + weight_dice * d_loss


if __name__ == "__main__":
    key = jax.random.PRNGKey(0)
    k_pred, k_tgt = jax.random.split(key)

    B, C, H, W = 2, 1, 16, 16   # CombinedLoss operates on [B, 1, H, W]
    pred = jax.random.normal(k_pred, (B, C, H, W), dtype=jnp.float32)
    target = jax.random.bernoulli(k_tgt, 0.5, (B, C, H, W)).astype(jnp.float32)

    loss = combined_loss(pred, target, weight_bce=1.0, weight_dice=1.0)
    loss = jax.block_until_ready(loss)

    ref = _reference_loss(pred, target)
    # approx-reciprocal + 1 Newton step sigmoid agrees to well under 1e-4.
    assert jnp.allclose(loss, ref, atol=1e-4, rtol=1e-4), (loss, ref)

    print("KERNEL_OK")
</pallas_src>

<mosaic_0001>
module attributes {stable_mosaic.version = 11 : i64} {
  func.func @_combined_loss_kernel(%arg0: i32, %arg1: i32, %arg2: memref<1x2x128xf32, #tpu.memory_space<vmem>>, %arg3: memref<1x2x128xf32, #tpu.memory_space<vmem>>, %arg4: memref<1x3x128xf32, #tpu.memory_space<vmem>>) attributes {dimension_semantics = [#tpu.dimension_semantics<parallel>, #tpu.dimension_semantics<arbitrary>], iteration_bounds = array<i64: 2, 1>, scalar_prefetch = 0 : i64, scratch_operands = 0 : i64, tpu.core_type = #tpu.core_type<tc>, window_params = [{transform_indices = @transform_0, window_bounds = array<i64: 1, 2, 128>}, {transform_indices = @transform_1, window_bounds = array<i64: 1, 2, 128>}, {transform_indices = @transform_2, window_bounds = array<i64: 1, 3, 128>}]} {
    %c0_i32 = arith.constant 0 : i32
    %0 = arith.cmpi eq, %arg1, %c0_i32 : i32
    %1 = arith.extui %0 : i1 to i32
    %c0_i32_0 = arith.constant 0 : i32
    %2 = arith.cmpi ne, %1, %c0_i32_0 : i32
    scf.if %2 {
      %cst_30 = arith.constant 0.000000e+00 : f32
      %45 = vector.broadcast %cst_30 : f32 to vector<1x3x128xf32>
      %c0_31 = arith.constant 0 : index
      %c0_32 = arith.constant 0 : index
      %c0_33 = arith.constant 0 : index
      %46 = vector.load %arg4[%c0_31, %c0_32, %c0_33] : memref<1x3x128xf32, #tpu.memory_space<vmem>>, vector<1x3x128xf32>
      tpu.vector_store %arg4[%c0_31, %c0_32, %c0_33], %45 {strides = array<i32>} : memref<1x3x128xf32, #tpu.memory_space<vmem>>, vector<1x3x128xf32>,
    } else {
    }
    %c0 = arith.constant 0 : index
    %c0_1 = arith.constant 0 : index
    %c0_2 = arith.constant 0 : index
    %3 = vector.load %arg2[%c0, %c0_1, %c0_2] : memref<1x2x128xf32, #tpu.memory_space<vmem>>, vector<1x2x128xf32>
    %c0_3 = arith.constant 0 : index
    %c0_4 = arith.constant 0 : index
    %c0_5 = arith.constant 0 : index
    %4 = vector.load %arg3[%c0_3, %c0_4, %c0_5] : memref<1x2x128xf32, #tpu.memory_space<vmem>>, vector<1x2x128xf32>
    %5 = math.absf %3 : vector<1x2x128xf32>
    %cst = arith.constant 0.000000e+00 : f32
    %6 = vector.broadcast %cst : f32 to vector<1x2x128xf32>
    %7 = arith.subf %6, %5 : vector<1x2x128xf32>
    %8 = math.exp %7 : vector<1x2x128xf32>
    %cst_6 = arith.constant 0.000000e+00 : f32
    %9 = vector.broadcast %cst_6 : f32 to vector<1x2x128xf32>
    %10 = arith.maximumf %3, %9 : vector<1x2x128xf32>
    %11 = arith.mulf %3, %4 : vector<1x2x128xf32>
    %12 = arith.subf %10, %11 : vector<1x2x128xf32>
    %13 = math.log1p %8 : vector<1x2x128xf32>
    %14 = arith.addf %12, %13 : vector<1x2x128xf32>
    %cst_7 = arith.constant 1.000000e+00 : f32
    %15 = vector.broadcast %cst_7 : f32 to vector<1x2x128xf32>
    %16 = arith.addf %15, %8 : vector<1x2x128xf32>
    %17 = tpu.reciprocal %16 {approx = true} : vector<1x2x128xf32> -> vector<1x2x128xf32>
    %cst_8 = arith.constant 1.000000e+00 : f32
    %18 = vector.broadcast %cst_8 : f32 to vector<1x2x128xf32>
    %19 = arith.addf %18, %8 : vector<1x2x128xf32>
    %20 = arith.mulf %19, %17 : vector<1x2x128xf32>
    %cst_9 = arith.constant 2.000000e+00 : f32
    %21 = vector.broadcast %cst_9 : f32 to vector<1x2x128xf32>
    %22 = arith.subf %21, %20 : vector<1x2x128xf32>
    %23 = arith.mulf %17, %22 : vector<1x2x128xf32>
    %cst_10 = arith.constant 0.000000e+00 : f32
    %24 = vector.broadcast %cst_10 : f32 to vector<1x2x128xf32>
    %25 = arith.cmpf oge, %3, %24 : vector<1x2x128xf32>
    %26 = arith.mulf %8, %23 : vector<1x2x128xf32>
    %27 = arith.select %25, %23, %26 : vector<1x2x128xi1>, vector<1x2x128xf32>
    %c0_11 = arith.constant 0 : index
    %c0_12 = arith.constant 0 : index
    %c0_13 = arith.constant 0 : index
    %28 = vector.load %arg4[%c0_11, %c0_12, %c0_13] : memref<1x3x128xf32, #tpu.memory_space<vmem>>, vector<1x1x128xf32>
    %cst_14 = arith.constant dense<0.000000e+00> : vector<1x128xf32>
    %29 = vector.multi_reduction <add>, %14, %cst_14 [1] : vector<1x2x128xf32> to vector<1x128xf32>
    %30 = vector.shape_cast %29 : vector<1x128xf32> to vector<1x1x128xf32>
    %31 = arith.addf %28, %30 : vector<1x1x128xf32>
    %c0_15 = arith.constant 0 : index
    %c0_16 = arith.constant 0 : index
    %c0_17 = arith.constant 0 : index
    %32 = vector.load %arg4[%c0_15, %c0_16, %c0_17] : memref<1x3x128xf32, #tpu.memory_space<vmem>>, vector<1x1x128xf32>
    tpu.vector_store %arg4[%c0_15, %c0_16, %c0_17], %31 {strides = array<i32>} : memref<1x3x128xf32, #tpu.memory_space<vmem>>, vector<1x1x128xf32>,
    %c0_18 = arith.constant 0 : index
    %c1 = arith.constant 1 : index
    %c0_19 = arith.constant 0 : index
    %33 = vector.load %arg4[%c0_18, %c1, %c0_19] : memref<1x3x128xf32, #tpu.memory_space<vmem>>, vector<1x1x128xf32>
    %34 = arith.mulf %27, %4 : vector<1x2x128xf32>
    %cst_20 = arith.constant dense<0.000000e+00> : vector<1x128xf32>
    %35 = vector.multi_reduction <add>, %34, %cst_20 [1] : vector<1x2x128xf32> to vector<1x128xf32>
    %36 = vector.shape_cast %35 : vector<1x128xf32> to vector<1x1x128xf32>
    %37 = arith.addf %33, %36 : vector<1x1x128xf32>
    %c0_21 = arith.constant 0 : index
    %c1_22 = arith.constant 1 : index
    %c0_23 = arith.constant 0 : index
    %38 = vector.load %arg4[%c0_21, %c1_22, %c0_23] : memref<1x3x128xf32, #tpu.memory_space<vmem>>, vector<1x1x128xf32>
    tpu.vector_store %arg4[%c0_21, %c1_22, %c0_23], %37 {strides = array<i32>} : memref<1x3x128xf32, #tpu.memory_space<vmem>>, vector<1x1x128xf32>,
    %c0_24 = arith.constant 0 : index
    %c2 = arith.constant 2 : index
    %c0_25 = arith.constant 0 : index
    %39 = vector.load %arg4[%c0_24, %c2, %c0_25] : memref<1x3x128xf32, #tpu.memory_space<vmem>>, vector<1x1x128xf32>
    %40 = arith.addf %27, %4 : vector<1x2x128xf32>
    %cst_26 = arith.constant dense<0.000000e+00> : vector<1x128xf32>
    %41 = vector.multi_reduction <add>, %40, %cst_26 [1] : vector<1x2x128xf32> to vector<1x128xf32>
    %42 = vector.shape_cast %41 : vector<1x128xf32> to vector<1x1x128xf32>
    %43 = arith.addf %39, %42 : vector<1x1x128xf32>
    %c0_27 = arith.constant 0 : index
    %c2_28 = arith.constant 2 : index
    %c0_29 = arith.constant 0 : index
    %44 = vector.load %arg4[%c0_27, %c2_28, %c0_29] : memref<1x3x128xf32, #tpu.memory_space<vmem>>, vector<1x1x128xf32>
    tpu.vector_store %arg4[%c0_27, %c2_28, %c0_29], %43 {strides = array<i32>} : memref<1x3x128xf32, #tpu.memory_space<vmem>>, vector<1x1x128xf32>,
    return
  }
  func.func @transform_0(%arg0: i32, %arg1: i32) -> (i32, i32, i32) {
    %c0_i32 = arith.constant 0 : i32
    %c0_i32_0 = arith.constant 0 : i32
    return %arg0, %arg1, %c0_i32 : i32, i32, i32
  }
  func.func @transform_1(%arg0: i32, %arg1: i32) -> (i32, i32, i32) {
    %c0_i32 = arith.constant 0 : i32
    %c0_i32_0 = arith.constant 0 : i32
    return %arg0, %arg1, %c0_i32 : i32, i32, i32
  }
  func.func @transform_2(%arg0: i32, %arg1: i32) -> (i32, i32, i32) {
    %c0_i32 = arith.constant 0 : i32
    %c0_i32_0 = arith.constant 0 : i32
    %c0_i32_1 = arith.constant 0 : i32
    return %arg0, %c0_i32, %c0_i32_0 : i32, i32, i32
  }
}

</mosaic_0001>

<bundles_post_ra>
// kernel: tpu_custom_call.1
= control target key start
LH: loop header
LB: loop body
LE: loop exit
PB: predicated region body
PF: predicated region fallthrough
CT: control target
= control target key end

     0   :  { %7 = vsyncpa [#allocation3], 0  ;;  %s698_s0 = inlined_call_operand.hbm [shape: f32[2,2,128], index: 0, kind: input, shape index: {}]   ;;  %s699_s1 = inlined_call_operand.hbm [shape: f32[2,2,128], index: 1, kind: input, shape index: {}]   ;;  %s700_s2 = inlined_call_operand.vmem [shape: f32[2,3,128], index: 2, kind: output, shape index: {}]  }
   0x1   :  { %9 = vsyncpa [#allocation3 + $0x1], 0 }
   0x2   :  { %10 = vsyncpa [#allocation5], 0 }
   0x3   :  { %12 = vsyncpa [#allocation5 + $0x1], 0  ;;  %s594_s9 = smov 0   ;;  %s596_s10 = smov 0  }
   0x4   :  { %s598_s11 = smov 0   ;;  %s600_s12 = smov 0  }
   0x5   :  { %s602_s13 = smov 0   ;;  %s604_s14 = smov 0  }
   0x6 LB: > { %s381_s15 = sadd.s32 4294967295, %s576_s14   ;;  %s30_s16 = sadd.s32 1, %s572_s13  ;;  %s576_s14 = sphi %s604_s14, %s18_s14   ;;  %s572_s13 = sphi %s602_s13, %s707_s13   ;;  %s568_s12 = sphi %s600_s12, %s706_s12   ;;  %s564_s11 = sphi %s598_s11, %s705_s11   ;;  %s560_s10 = sphi %s596_s10, %s704_s10   ;;  %s556_s9 = sphi %s594_s9, %s703_s9  }
   0x7   : > { %p32_p0 = scmp.ge.s32.totalorder %s30_s16, 2  ;;  %s39_s17 = sadd.s32 1, %s564_s11 }
   0x8   : > { %p46_p1 = scmp.ne.s32.totalorder %s564_s11, %s560_s10  ;;  %p47_p2 = scmp.eq.s32.totalorder %s576_s14, 0 }
   0x9   : > { %s709_s16 = smov (%p32_p0, %s30_s16), 0  ;;  %p52_p4 = scmp.ne.s32.totalorder %s560_s10, %s556_s9 }
   0xa   : > { %p630_p3 = por %p47_p2, %p46_p1  ;;  %s34_s19 = ssub.s32 %s572_s13, %s709_s16 }
   0xb   : > { %p53_p5 = scmp.eq.s32.totalorder %s381_s15, 0  ;;  %p37_p6 = scmp.eq.s32.totalorder %s34_s19, 0 }
   0xc   : > { %p406_p8 = scmp.lt.s32.totalorder %s576_s14, 2  ;;  %s130_s22 = sand.u32 1, %s564_s11  }
   0xd   : > { %p637_p7 = por %p53_p5, %p52_p4  ;;  %s386_s23 = sshll.u32 %s572_s13, 1 }
   0xe   : > { %s643_s21 = scalar_select %p37_p6, %s564_s11, %s39_s17  }
   0xf   : > { %s385_s24 = sshll.u32 %s130_s22, 1  ;;  %s139_s27 = scalar_lea.hbm %s698_s0, %s386_s23 }
  0x10   : > { %s141_s28 = sshll.u32 %s139_s27, 4  ;;  %s134_s29 = scalar_lea.vmem [#allocation2], %s385_s24  ;;  %s142_s28 = int_to_ptr.hbm [resolvable:$true] %s141_s28 }
  0x11   : > { %s143_s30 = sshll.u32 %s134_s29, 4  ;;  %p400_p9 = pnand %p406_p8, %p630_p3  ;;  %s144_s30 = int_to_ptr.vmem [resolvable:$true] %s143_s30 }
  0x12   : > { %p389_p10 = scmp.ge.s32.totalorder %s576_s14, 1  ;;  %p168_p11 = scmp.lt.s32.totalorder %s576_s14, 3 }
  0x13   : > { %s131_s3 = scalar_lea.sflag [#allocation3], %s130_s22  ;;  %s159_s6 = scalar_lea.hbm %s699_s1, %s386_s23 }
  0x14   : > { %402 = dma.hbm_to_vmem [thread:$0]  (!%p400_p9), %s142_s28, 32, %s144_s30, %s131_s3  }
  0x15   : > { %p169_p12 = pnand %p389_p10, %p168_p11  ;;  %s161_s7 = sshll.u32 %s159_s6, 4  ;;  %s162_s7 = int_to_ptr.hbm [resolvable:$true] %s161_s7 }
  0x16   : > { %s154_s8 = scalar_lea.vmem [#allocation4], %s385_s24  ;;  %s151_s15 = scalar_lea.sflag [#allocation5], %s130_s22 }
  0x17   : > { %s163_s9 = sshll.u32 %s154_s8, 4  ;;  %172 = sbr.rel (%p169_p12) target bundleno = 83 (0x53), region = 28  ;;  %s164_s9 = int_to_ptr.vmem [resolvable:$true] %s163_s9 }
  0x18   : > { %405 = dma.hbm_to_vmem [thread:$0]  (!%p400_p9), %s162_s7, 32, %s164_s9, %s151_s15  }
  0x19   : > { %s174_s17 = sand.u32 (!%p169_p12), 1, %s560_s10  }
  0x1a   : > { %s390_s18 = sshll.u32 (!%p169_p12), %s174_s17, 1  ;;  %s175_s19 = scalar_lea.sflag (!%p169_p12), [#allocation3], %s174_s17 }
  0x1b   : > { %s178_s25 = scalar_lea.vmem (!%p169_p12), [#allocation2], %s390_s18 }
  0x1c   : > { %547 = dma.done.wait (%p637_p7), %s175_s19, 32  }
  0x1d   : > { %549 = vsyncadd (%p637_p7), %s175_s19, 4294967264  ;;  %s185_s23 = scalar_lea.sflag [#allocation5], %s174_s17  ;;  %s188_s24 = scalar_lea.vmem [#allocation4], %s390_s18 }
  0x1e   : > { %551 = dma.done.wait (%p637_p7), %s185_s23, 32  }
  0x1f   : > { %553 = vsyncadd (%p637_p7), %s185_s23, 4294967264  ;;  %p214_p13 = scmp.lt.s32.totalorder %s568_s12, 1  ;;  %v578_v0 = vmov 0.0   ;;  %v223_v1 = vld [vmem:[%s178_s25] sm:$0x3]  ;;  %vm251_vm1 = vcmask 1041408  }
  0x20   : > { %v225_v2 = vand.u32 2147483647, %v223_v1  ;;  %v224_v8 = vld [vmem:[%s188_s24] sm:$0x3]  ;;  %v229_v10 = vmax.f32 %v223_v1, 0.0  ;;  %vm247_vm2 = vcmp.ge.f32.partialorder %v223_v1, 0.0 }
  0x21   : > { %s711_s12 = smov (!%p214_p13, %s568_s12), 1  ;;  %v230_v11 = vmul.f32 %v224_v8, %v223_v1 }
  0x22   : > { %s392_s22 = sshll.u32 %s711_s12, 2  ;;  %v226_v3 = vsub.f32 0.0, %v225_v2 }
  0x23   : > { %s671_s28 = scalar_lea.vmem %s700_s2, %s392_s22  ;;  %v231_v15 = vsub.f32 %v229_v10, %v230_v11 }
  0x24   : > { %222 = vst [vmem:[%s671_s28] sm:$0x7] %v578_v0  ;;  %v227_v4 = vmul.f32 1.442695, %v226_v3 }
  0x26   : > { %456 = vpow2.f32 %v227_v4 }
  0x2b   : > { %v250_v37 = vld [vmem:[%s671_s28] sm:$0x1]  ;;  %v261_v48 = vld [vmem:[%s671_s28 + $0x1] sm:$0x1]  ;;  %v272_v49 = vld [vmem:[%s671_s28 + $0x2] sm:$0x1] }
  0x2c   : > { %v457_v5 = vpop.eup %456 }
  0x2d   : > { %v232_v6 = vadd.f32 1.0, %v457_v5  ;;  %v235_v7 = vmul.f32 -0.5, %v457_v5  ;;  %v238_v12 = vand.u32 2147483647, %v457_v5 }
  0x2f   : > { %458 = vlog2.f32 %v232_v6  ;;  %v236_v9 = vadd.f32 1.0, %v235_v7  ;;  %vm239_vm0 = vcmp.lt.f32.partialorder %v238_v12, 0.0004427343 }
  0x30   : > { %460 = vrcp.f32 %v232_v6 }
  0x31   : > { %v237_v13 = vmul.f32 %v457_v5, %v236_v9 }
  0x35   : > { %v459_v14 = vpop.eup %458 }
  0x36   : > { %v461_v16 = vpop.eup %460  ;;  %v234_v17 = vmul.f32 0.6931472, %v459_v14 }
  0x37   : > { %v244_v18 = vmul.f32 %v461_v16, %v232_v6 }
  0x38   : > { %v240_v19 = vsel %vm239_vm0, %v237_v13, %v234_v17 }
  0x39   : > { %v241_v20 = vadd.f32 %v240_v19, %v231_v15  ;;  %v245_v21 = vsub.f32 2.0, %v244_v18 }
  0x3b   : > { %v252_v22 = vsel %vm251_vm1, %v241_v20, 0.0  ;;  %v246_v23 = vmul.f32 %v461_v16, %v245_v21 }
  0x3c   : > { %v253_v24 = vrot.slane %v252_v22, 4 }
  0x3d   : > { %v248_v25 = vmul.f32 %v457_v5, %v246_v23 }
  0x3e   : > { %v254_v26 = vadd.f32 %v253_v24, %v252_v22 }
  0x3f   : > { %v249_v27 = vsel %vm247_vm2, %v246_v23, %v248_v25 }
  0x40   : > { %v255_v28 = vrot.slane %v254_v26, 2  ;;  %v262_v29 = vmul.f32 %v249_v27, %v224_v8  ;;  %v273_v30 = vadd.f32 %v249_v27, %v224_v8 }
  0x42   : > { %v256_v31 = vadd.f32 %v255_v28, %v254_v26  ;;  %v263_v32 = vsel %vm251_vm1, %v262_v29, 0.0  ;;  %v274_v33 = vsel %vm251_vm1, %v273_v30, 0.0 }
  0x43   : > { %v264_v34 = vrot.slane %v263_v32, 4  ;;  %v275_v35 = vrot.slane %v274_v33, 4 }
  0x44   : > { %v257_v36 = vrot.slane %v256_v31, 1 }
  0x45   : > { %v265_v38 = vadd.f32 %v264_v34, %v263_v32  ;;  %v276_v39 = vadd.f32 %v275_v35, %v274_v33 }
  0x46   : > { %v258_v40 = vadd.f32 %v257_v36, %v256_v31 }
  0x47   : > { %v266_v41 = vrot.slane %v265_v38, 2  ;;  %v277_v42 = vrot.slane %v276_v39, 2 }
  0x48   : > { %v259_v43 = vadd.f32 %v258_v40, %v250_v37 }
  0x49   : > { %v267_v44 = vadd.f32 %v266_v41, %v265_v38  ;;  %v278_v45 = vadd.f32 %v277_v42, %v276_v39 }
  0x4a   : > { %260 = vst [vmem:[%s671_s28] sm:$0x1] %v259_v43 }
  0x4b   : > { %v268_v46 = vrot.slane %v267_v44, 1  ;;  %v279_v47 = vrot.slane %v278_v45, 1 }
  0x4d   : > { %v269_v50 = vadd.f32 %v268_v46, %v267_v44  ;;  %v280_v51 = vadd.f32 %v279_v47, %v278_v45 }
  0x4f   : > { %v270_v52 = vadd.f32 %v269_v50, %v261_v48  ;;  %v281_v53 = vadd.f32 %v280_v51, %v272_v49 }
  0x51   : > { %271 = vst [vmem:[%s671_s28 + $0x1] sm:$0x1] %v270_v52 }
  0x52   : > { %282 = vst [vmem:[%s671_s28 + $0x2] sm:$0x1] %v281_v53 }
  0x53 PF: > { %s18_s14 = sadd.s32 1, %s576_s14   ;;  %s703_s9 = smov %s560_s10 }
  0x54   : > { %p15_p0 = scmp.ge.s32.totalorder %s18_s14, 4   ;;  %s704_s10 = smov %s564_s11 }
  0x55   : > { %s705_s11 = smov %s643_s21  ;;  %s706_s12 = smov %s572_s13 }
  0x56   : > { %s707_s13 = smov %s709_s16  ;;  %17 = sbr.rel (!%p15_p0) target bundleno = 6 (0x6), region = 85 }
  0x5b   :  { %302 = vsyncpa [#allocation3], 1 }
  0x5c   :  { %304 = vsyncpa [#allocation3 + $0x1], 1 }
  0x5d   :  { %305 = vsyncpa [#allocation5], 1 }
  0x5e   :  { %307 = vsyncpa [#allocation5 + $0x1], 1 }

</bundles_post_ra>
